<compile_context>
chip_gen: v7x
topology: tpu7x:2x2x1
jax: 0.10.0
libtpu: 0.0.40
codegen_flags: <defaults>
</compile_context>

<pallas_src>
import jax
import jax.numpy as jnp
from jax.experimental import pallas as pl
from jax.experimental.pallas import tpu as pltpu

# Logical sizes (from the PyTorch module)
IN_F = 2
HIDDEN = 50
OUT_F = 1

# TPU-friendly sizes
H_PAD = 64        # hidden 50 -> 64 sublanes (8 f32 vregs per lane column)
P_LANES = 128     # packed parameter tile is one (64, 128) slab (32 KiB)
TB_MAX = 8192     # batch (lane) tile upper bound; multiple of 128


def _round_up(n, m):
    return ((n + m - 1) // m) * m


def mlp_kernel(xT_ref, p_ref, o_ref):
    xT = xT_ref[...]                       # (IN_F, TB)  batch on lanes
    p = p_ref[...]                         # (H_PAD, 128) packed params
    w1c0 = p[:, 0:1]                       # (H_PAD, 1)  W1[0, :]
    w1c1 = p[:, 1:2]                       # (H_PAD, 1)  W1[1, :]
    b1c = p[:, 2:3]                        # (H_PAD, 1)  b1
    w2c = p[:, 3:4]                        # (H_PAD, 1)  W2[:, 0]
    b2 = p[0:1, 4:5]                       # (1, 1)      b2

    # fc1 + ReLU: hidden on sublanes, batch on lanes (pure VALU work).
    h = jnp.maximum(w1c0 * xT[0:1, :] + w1c1 * xT[1:2, :] + b1c, 0.0)   # (H_PAD, TB)
    # fc2: sublane reduction (VALU adds across the 8 h-vregs + one in-vreg reduce).
    z = jnp.sum(h * w2c, axis=0, keepdims=True) + b2                    # (1, TB)
    o_ref[...] = jax.nn.sigmoid(z)                                      # EUP


def pad_params(w1, b1, w2, b2):
    """One-time packing of all parameters into a single (H_PAD, 128) tile.

    w1: (2, 50) stored as (in_features, out_features); b1: (50,);
    w2: (50, 1); b2: (1,).  Call once at init, NOT per forward.
    """
    p = jnp.zeros((H_PAD, P_LANES), jnp.float32)
    p = p.at[:HIDDEN, 0].set(w1[0, :].astype(jnp.float32))
    p = p.at[:HIDDEN, 1].set(w1[1, :].astype(jnp.float32))
    p = p.at[:HIDDEN, 2].set(b1.astype(jnp.float32))
    p = p.at[:HIDDEN, 3].set(w2[:, 0].astype(jnp.float32))
    p = p.at[0, 4].set(jnp.asarray(b2, jnp.float32).reshape(-1)[0])
    return p


def _choose_tb(B):
    # Multiple of 128; for large B give at least 2 grid steps so both v7x
    # TensorCores get work; cap at TB_MAX so per-tile VMEM stays small.
    tb = _round_up(max(pl.cdiv(B, 2), 1), 128)
    return min(TB_MAX, max(128, tb))


def binary_classifier_forward(x, p):
    """x: (B, 2); p: packed params from pad_params(). Returns (B, 1) float32."""
    x = x.astype(jnp.float32)              # x.float()
    B = x.shape[0]
    xT = x.T                               # (2, B): batch on lanes, one cheap pass

    TB = _choose_tb(B)
    grid = (pl.cdiv(B, TB),)               # partial trailing block is OK

    out = pl.pallas_call(
        mlp_kernel,
        out_shape=jax.ShapeDtypeStruct((OUT_F, B), jnp.float32),
        grid=grid,
        in_specs=[
            pl.BlockSpec((IN_F, TB), lambda i: (0, i)),      # xT tile (lane-dense)
            pl.BlockSpec((H_PAD, P_LANES), lambda i: (0, 0)),  # packed params (resident)
        ],
        out_specs=pl.BlockSpec((OUT_F, TB), lambda i: (0, i)),  # lane-dense output row
        compiler_params=pltpu.CompilerParams(
            dimension_semantics=("parallel",)),
    )(xT, p)

    return out.reshape(B, OUT_F)           # (1, B) -> (B, 1), no data movement


def init_params(key):
    """Deterministic parameter init mimicking nn.Linear shapes.
    Stored as (in_features, out_features) for the x @ W layout."""
    k1, k2, k3, k4 = jax.random.split(key, 4)
    bound1 = 1.0 / jnp.sqrt(IN_F)
    w1 = jax.random.uniform(k1, (IN_F, HIDDEN), jnp.float32, -bound1, bound1)
    b1 = jax.random.uniform(k2, (HIDDEN,), jnp.float32, -bound1, bound1)
    bound2 = 1.0 / jnp.sqrt(HIDDEN)
    w2 = jax.random.uniform(k3, (HIDDEN, OUT_F), jnp.float32, -bound2, bound2)
    b2 = jax.random.uniform(k4, (OUT_F,), jnp.float32, -bound2, bound2)
    return w1, b1, w2, b2


def reference_forward(x, w1, b1, w2, b2):
    x = x.astype(jnp.float32)
    h = jnp.maximum(x @ w1 + b1, 0.0)
    return jax.nn.sigmoid(h @ w2 + b2)


if __name__ == "__main__":
    key = jax.random.PRNGKey(0)
    kx, kp = jax.random.split(key)

    w1, b1, w2, b2 = init_params(kp)
    p = pad_params(w1, b1, w2, b2)          # pack ONCE (hoisted out of hot path)
    fwd = jax.jit(binary_classifier_forward)

    # Small deterministic input: batch=4, features=2 (what the forward implies).
    x_small = jax.random.normal(kx, (4, IN_F), dtype=jnp.float32)
    out_small = jax.block_until_ready(fwd(x_small, p))
    ref_small = reference_forward(x_small, w1, b1, w2, b2)
    assert out_small.shape == (4, OUT_F), out_small.shape
    assert jnp.allclose(out_small, ref_small, atol=1e-5, rtol=1e-5)

    # Also exercise multi-step grid + partial trailing block (B not a multiple of 128).
    x_big = jax.random.normal(kx, (300, IN_F), dtype=jnp.float32)
    out_big = jax.block_until_ready(fwd(x_big, p))
    ref_big = reference_forward(x_big, w1, b1, w2, b2)
    assert out_big.shape == (300, OUT_F), out_big.shape
    assert jnp.allclose(out_big, ref_big, atol=1e-5, rtol=1e-5)

    print("KERNEL_OK")
</pallas_src>

<mosaic_0001>
module attributes {stable_mosaic.version = 11 : i64} {
  func.func @mlp_kernel(%arg0: i32, %arg1: memref<2x128xf32, #tpu.memory_space<vmem>>, %arg2: memref<64x128xf32, #tpu.memory_space<vmem>>, %arg3: memref<1x128xf32, #tpu.memory_space<vmem>>) attributes {dimension_semantics = [#tpu.dimension_semantics<parallel>], iteration_bounds = array<i64: 1>, scalar_prefetch = 0 : i64, scratch_operands = 0 : i64, tpu.core_type = #tpu.core_type<tc>, window_params = [{transform_indices = @transform_0, window_bounds = array<i64: 2, 128>}, {pipeline_mode = #tpu.pipeline_mode<synchronous>, transform_indices = @transform_1, window_bounds = array<i64: 64, 128>}, {transform_indices = @transform_2, window_bounds = array<i64: 1, 128>}]} {
    %c0 = arith.constant 0 : index
    %c0_0 = arith.constant 0 : index
    %0 = vector.load %arg1[%c0, %c0_0] : memref<2x128xf32, #tpu.memory_space<vmem>>, vector<2x128xf32>
    %c0_1 = arith.constant 0 : index
    %c0_2 = arith.constant 0 : index
    %1 = vector.load %arg2[%c0_1, %c0_2] : memref<64x128xf32, #tpu.memory_space<vmem>>, vector<64x128xf32>
    %2 = vector.extract_strided_slice %1 {offsets = [0, 0], sizes = [64, 1], strides = [1, 1]} : vector<64x128xf32> to vector<64x1xf32>
    %3 = vector.extract_strided_slice %1 {offsets = [0, 1], sizes = [64, 1], strides = [1, 1]} : vector<64x128xf32> to vector<64x1xf32>
    %4 = vector.extract_strided_slice %1 {offsets = [0, 2], sizes = [64, 1], strides = [1, 1]} : vector<64x128xf32> to vector<64x1xf32>
    %5 = vector.extract_strided_slice %1 {offsets = [0, 3], sizes = [64, 1], strides = [1, 1]} : vector<64x128xf32> to vector<64x1xf32>
    %6 = vector.extract_strided_slice %1 {offsets = [0, 4], sizes = [1, 1], strides = [1, 1]} : vector<64x128xf32> to vector<1x1xf32>
    %7 = vector.extract_strided_slice %0 {offsets = [0, 0], sizes = [1, 128], strides = [1, 1]} : vector<2x128xf32> to vector<1x128xf32>
    %8 = vector.broadcast %2 : vector<64x1xf32> to vector<64x128xf32>
    %9 = vector.broadcast %7 : vector<1x128xf32> to vector<64x128xf32>
    %10 = arith.mulf %8, %9 : vector<64x128xf32>
    %11 = vector.extract_strided_slice %0 {offsets = [1, 0], sizes = [1, 128], strides = [1, 1]} : vector<2x128xf32> to vector<1x128xf32>
    %12 = vector.broadcast %3 : vector<64x1xf32> to vector<64x128xf32>
    %13 = vector.broadcast %11 : vector<1x128xf32> to vector<64x128xf32>
    %14 = arith.mulf %12, %13 : vector<64x128xf32>
    %15 = arith.addf %10, %14 : vector<64x128xf32>
    %16 = vector.broadcast %4 : vector<64x1xf32> to vector<64x128xf32>
    %17 = arith.addf %15, %16 : vector<64x128xf32>
    %cst = arith.constant 0.000000e+00 : f32
    %18 = vector.broadcast %cst : f32 to vector<64x128xf32>
    %19 = arith.maximumf %17, %18 : vector<64x128xf32>
    %20 = vector.broadcast %5 : vector<64x1xf32> to vector<64x128xf32>
    %21 = arith.mulf %19, %20 : vector<64x128xf32>
    %cst_3 = arith.constant dense<0.000000e+00> : vector<128xf32>
    %22 = vector.multi_reduction <add>, %21, %cst_3 [0] : vector<64x128xf32> to vector<128xf32>
    %23 = vector.shape_cast %22 : vector<128xf32> to vector<1x128xf32>
    %24 = vector.broadcast %6 : vector<1x1xf32> to vector<1x128xf32>
    %25 = arith.addf %23, %24 : vector<1x128xf32>
    %26 = arith.negf %25 : vector<1x128xf32>
    %27 = math.exp %26 : vector<1x128xf32>
    %cst_4 = arith.constant 1.000000e+00 : f32
    %28 = vector.broadcast %cst_4 : f32 to vector<1x128xf32>
    %29 = arith.addf %28, %27 : vector<1x128xf32>
    %30 = arith.divf %28, %29 : vector<1x128xf32>
    %c0_5 = arith.constant 0 : index
    %c0_6 = arith.constant 0 : index
    %31 = vector.load %arg3[%c0_5, %c0_6] : memref<1x128xf32, #tpu.memory_space<vmem>>, vector<1x128xf32>
    tpu.vector_store %arg3[%c0_5, %c0_6], %30 {strides = array<i32>} : memref<1x128xf32, #tpu.memory_space<vmem>>, vector<1x128xf32>,
    return
  }
  func.func @transform_0(%arg0: i32) -> (i32, i32) {
    %c0_i32 = arith.constant 0 : i32
    %c0_i32_0 = arith.constant 0 : i32
    return %c0_i32, %arg0 : i32, i32
  }
  func.func @transform_1(%arg0: i32) -> (i32, i32) {
    %c0_i32 = arith.constant 0 : i32
    %c0_i32_0 = arith.constant 0 : i32
    %c0_i32_1 = arith.constant 0 : i32
    return %c0_i32, %c0_i32_0 : i32, i32
  }
  func.func @transform_2(%arg0: i32) -> (i32, i32) {
    %c0_i32 = arith.constant 0 : i32
    %c0_i32_0 = arith.constant 0 : i32
    return %c0_i32, %arg0 : i32, i32
  }
}

</mosaic_0001>

<bundles_post_ra>
// kernel: binary_classifier_forward.1
= control target key start
LH: loop header
LB: loop body
LE: loop exit
PB: predicated region body
PF: predicated region fallthrough
CT: control target
= control target key end

     0   :  { %7 = vsyncpa [#allocation3], 0  ;;  %s401_s0 = inlined_call_operand.vmem [shape: f32[2,4], index: 0, kind: input, shape index: {}]   ;;  %s402_s1 = inlined_call_operand.hbm [shape: f32[64,128], index: 1, kind: input, shape index: {}]   ;;  %s403_s2 = inlined_call_operand.hbm [shape: f32[1,4], index: 2, kind: output, shape index: {}]  }
   0x1   :  { %8 = vsyncpa [#allocation4], 0  ;;  %s350_s9 = smov [#allocation2]   ;;  %s302_s13 = scalar_lea.hbm %s402_s1, 1024 }
   0x2   :  { %s16_s10 = sshll.u32 %s350_s9, 4  ;;  %p303_p0 = scmp.ne.s32.totalorder %s402_s1, %s302_s13  ;;  %s17_s10 = int_to_ptr.vmem [resolvable:$true] %s16_s10 }
   0x3   :  { %p306_p1 = scmp.lt.u32.totalorder %s302_s13, %s402_s1 }
   0x5   :  { %p308_p2 = pnand %p306_p1, %p303_p0 }
   0x7   :  { %311 = shalt.err (!%p308_p2)
}
   0x8   :  { %s312_s18 = scalar_lea.vmem %s17_s10, 1024  ;;  %p317_p4 = scmp.lt.s32.totalorder %s17_s10, %s17_s10 }
   0x9   :  { %p313_p3 = scmp.ne.s32.totalorder %s17_s10, %s312_s18  ;;  %p318_p5 = scmp.lt.s32.totalorder %s312_s18, %s312_s18 }
   0xb   :  { %p319_p6 = por %p318_p5, %p317_p4 }
   0xd   :  { %p320_p7 = pnand %p319_p6, %p313_p3 }
   0xf   :  { %323 = shalt.err (!%p320_p7)
}
  0x10   :  { %s351_s19 = smov 128   ;;  %s352_s20 = smov 8  }
  0x11   :  { %22 = dma.hbm_to_vmem [thread:$0]  %s402_s1, 1024, %s17_s10, [#allocation3], %s351_s19, %s351_s19, %s352_s20  }
  0x12   :  { %346 = dma.done.wait [#allocation3], 1024  }
  0x13   :  { %347 = vsyncadd [#allocation3], 4294966272  ;;  %v353_v0 = vmov 2   ;;  %v354_v1 = vmov 1   ;;  %v27_v2 = vld [vmem:[#allocation2] sm:$0xff]  ;;  %v28_v3 = vld [vmem:[#allocation2 + $0x8] sm:$0xff]  ;;  %v75_v29 = vlaneseq }
  0x14   :  { %278 = vset.pattern.permute.xlu0 %v353_v0  ;;  %277 = vset.pattern.permute.xlu1 %v354_v1  ;;  %v31_v4 = vld [vmem:[#allocation2 + $0x20] sm:$0xff]  ;;  %v29_v5 = vld [vmem:[#allocation2 + $0x10] sm:$0xff]  ;;  %v32_v6 = vld [vmem:[#allocation2 + $0x28] sm:$0xff]  ;;  %v355_v9 = vmov 0   ;;  %v356_v11 = vmov 3   ;;  %v357_v12 = vmov 4  }
  0x15   :  { %140 = vperm.xlu0 %278, %v27_v2   ;;  %88 = vperm.xlu1 %277, %v27_v2   ;;  %v30_v7 = vld [vmem:[#allocation2 + $0x18] sm:$0xff]  ;;  %v33_v8 = vld [vmem:[#allocation2 + $0x30] sm:$0xff]  ;;  %v76_v31 = vshrl.u32 %v75_v29, 7  ;;  %v26_v36 = vld [vmem:[%s401_s0] sm:$0x3]  ;;  %s358_s0 = smov [#allocation5]  }
  0x16   :  { %v34_v10 = vld [vmem:[#allocation2 + $0x38] sm:$0xff]  ;;  %s258_s24 = sshll.u32 %s358_s0, 4  ;;  %s259_s24 = int_to_ptr.vmem [resolvable:$true] %s258_s24 }
  0x17   :  { %v77_v33 = vsub.s32 0, %v76_v31  ;;  %v121_v34 = vsub.s32 1, %v76_v31  ;;  %s324_s25 = scalar_lea.vmem %s259_s24, 16  ;;  %s328_s26 = scalar_lea.vmem %s259_s24, 32 }
  0x18   :  { %p325_p8 = scmp.ne.s32.totalorder %s259_s24, %s324_s25  ;;  %p329_p9 = scmp.lt.s32.totalorder %s259_s24, %s259_s24 }
  0x19   :  { %281 = vset.pattern.permute.xlu0 %v354_v1  ;;  %92 = vperm.xlu1 %277, %v28_v3   ;;  %v78_v37 = vrot.slane %v26_v36, %v77_v33  ;;  %v122_v39 = vrot.slane %v26_v36, %v121_v34  ;;  %p330_p10 = scmp.lt.s32.totalorder %s328_s26, %s324_s25 }
  0x1a   :  { %104 = vperm.xlu0 %281, %v31_v4  }
  0x1b   :  { %p331_p11 = por %p330_p10, %p329_p9 }
  0x1d   :  { %96 = vperm.xlu1 %277, %v29_v5   ;;  %p332_p12 = pnand %p331_p11, %p325_p8 }
  0x1e   :  { %108 = vperm.xlu0 %281, %v32_v6  }
  0x21   :  { %100 = vperm.xlu1 %277, %v30_v7  }
  0x22   :  { %112 = vperm.xlu0 %281, %v33_v8  }
  0x25   :  { %279 = vset.pattern.permute.xlu1 %v353_v0 }
  0x26   :  { %287 = vset.pattern.permute.xlu0 %v355_v9  ;;  %144 = vperm.xlu1 %279, %v28_v3  }
  0x27   :  { %37 = vperm.xlu0 %287, %v27_v2  }
  0x2a   :  { %280 = vset.pattern.permute.xlu1 %v355_v9 }
  0x2b   :  { %42 = vperm.xlu0 %287, %v28_v3   ;;  %57 = vperm.xlu1 %280, %v31_v4  }
  0x2f   :  { %47 = vperm.xlu0 %287, %v29_v5   ;;  %282 = vset.pattern.permute.xlu1 %v353_v0 }
  0x30   :  { %148 = vperm.xlu1 %282, %v29_v5  }
  0x33   :  { %52 = vperm.xlu0 %287, %v30_v7  }
  0x34   :  { %283 = vset.pattern.permute.xlu1 %v355_v9 }
  0x35   :  { %62 = vperm.xlu1 %283, %v32_v6  }
  0x37   :  { %72 = vperm.xlu0 %287, %v34_v10  }
  0x39   :  { %284 = vset.pattern.permute.xlu1 %v353_v0 }
  0x3a   :  { %152 = vperm.xlu1 %284, %v30_v7  }
  0x3b   :  { %290 = vset.pattern.permute.xlu0 %v356_v11 }
  0x3c   :  { %188 = vperm.xlu0 %290, %v27_v2  }
  0x3e   :  { %285 = vset.pattern.permute.xlu1 %v356_v11 }
  0x3f   :  { %192 = vperm.xlu1 %285, %v28_v3  }
  0x40   :  { %200 = vperm.xlu0 %290, %v30_v7  }
  0x43   :  { %286 = vset.pattern.permute.xlu1 %v355_v9 }
  0x44   :  { %67 = vperm.xlu1 %286, %v33_v8   ;;  %294 = vset.pattern.permute.xlu0 %v353_v0 }
  0x45   :  { %168 = vperm.xlu0 %294, %v34_v10  }
  0x48   :  { %288 = vset.pattern.permute.xlu1 %v353_v0 }
  0x49   :  { %156 = vperm.xlu1 %288, %v31_v4   ;;  %295 = vset.pattern.permute.xlu0 %v356_v11 }
  0x4a   :  { %216 = vperm.xlu0 %295, %v34_v10  }
  0x4d   :  { %289 = vset.pattern.permute.xlu1 %v356_v11 }
  0x4e   :  { %196 = vperm.xlu1 %289, %v29_v5   ;;  %297 = vset.pattern.permute.xlu0 %v357_v12 }
  0x52   :  { %291 = vset.pattern.permute.xlu1 %v354_v1 }
  0x53   :  { %116 = vperm.xlu1 %291, %v34_v10  }
  0x57   :  { %292 = vset.pattern.permute.xlu1 %v353_v0 }
  0x58   :  { %160 = vperm.xlu1 %292, %v32_v6  }
  0x5c   :  { %164 = vperm.xlu1 %292, %v33_v8  }
  0x60   :  { %293 = vset.pattern.permute.xlu1 %v356_v11 }
  0x61   :  { %204 = vperm.xlu1 %293, %v31_v4  }
  0x65   :  { %208 = vperm.xlu1 %293, %v32_v6  }
  0x69   :  { %212 = vperm.xlu1 %293, %v33_v8  }
  0x6d   :  { %296 = vset.pattern.permute.xlu1 %v357_v12 }
  0x6e   :  { %241 = vperm.xlu1 %296, %v27_v2  }
  0x94   :  { %v89_v13 = vpop.permute.xlu1 %88  ;;  %v141_v16 = vpop.permute.xlu0 %140 }
  0x95   :  { %v123_v45 = vmul.f32 %v122_v39, %v89_v13 }
  0x98   :  { %v93_v14 = vpop.permute.xlu1 %92 }
  0x99   :  { %v105_v19 = vpop.permute.xlu0 %104  ;;  %v124_v43 = vmul.f32 %v122_v39, %v93_v14 }
  0x9a   :  { %v127_v56 = vmul.f32 %v122_v39, %v105_v19 }
  0x9c   :  { %v97_v15 = vpop.permute.xlu1 %96 }
  0x9d   :  { %v109_v21 = vpop.permute.xlu0 %108  ;;  %v125_v47 = vmul.f32 %v122_v39, %v97_v15 }
  0x9e   :  { %v128_v60 = vmul.f32 %v122_v39, %v109_v21 }
  0xa0   :  { %v101_v17 = vpop.permute.xlu1 %100 }
  0xa1   :  { %v113_v23 = vpop.permute.xlu0 %112  ;;  %v126_v61 = vmul.f32 %v122_v39, %v101_v17 }
  0xa2   :  { %v129_v15 = vmul.f32 %v122_v39, %v113_v23 }
  0xa5   :  { %v145_v18 = vpop.permute.xlu1 %144 }
  0xa6   :  { %v38_v25 = vpop.permute.xlu0 %37 }
  0xa7   :  { %v79_v42 = vmul.f32 %v78_v37, %v38_v25 }
  0xa9   :  { %v131_v49 = vadd.f32 %v123_v45, %v79_v42 }
  0xaa   :  { %v58_v20 = vpop.permute.xlu1 %57  ;;  %v43_v27 = vpop.permute.xlu0 %42 }
  0xab   :  { %v80_v40 = vmul.f32 %v78_v37, %v43_v27  ;;  %v171_v55 = vadd.f32 %v141_v16, %v131_v49  ;;  %v83_v57 = vmul.f32 %v78_v37, %v58_v20 }
  0xad   :  { %v132_v48 = vadd.f32 %v124_v43, %v80_v40  ;;  %v179_v1 = vmax.f32 %v171_v55, 0.0  ;;  %v135_v4 = vadd.f32 %v127_v56, %v83_v57 }
  0xae   :  { %v48_v32 = vpop.permute.xlu0 %47 }
  0xaf   :  { %v149_v22 = vpop.permute.xlu1 %148  ;;  %v81_v44 = vmul.f32 %v78_v37, %v48_v32  ;;  %v172_v52 = vadd.f32 %v145_v18, %v132_v48 }
  0xb1   :  { %v133_v51 = vadd.f32 %v125_v47, %v81_v44  ;;  %v180_v63 = vmax.f32 %v172_v52, 0.0 }
  0xb2   :  { %v53_v38 = vpop.permute.xlu0 %52 }
  0xb3   :  { %v82_v53 = vmul.f32 %v78_v37, %v53_v38  ;;  %v173_v58 = vadd.f32 %v149_v22, %v133_v51 }
  0xb4   :  { %v63_v24 = vpop.permute.xlu1 %62 }
  0xb5   :  { %v84_v62 = vmul.f32 %v78_v37, %v63_v24  ;;  %v134_v0 = vadd.f32 %v126_v61, %v82_v53  ;;  %v181_v2 = vmax.f32 %v173_v58, 0.0 }
  0xb6   :  { %v73_v46 = vpop.permute.xlu0 %72 }
  0xb7   :  { %v86_v7 = vmul.f32 %v78_v37, %v73_v46  ;;  %v136_v10 = vadd.f32 %v128_v60, %v84_v62 }
  0xb9   :  { %v153_v26 = vpop.permute.xlu1 %152 }
  0xba   :  { %v174_v8 = vadd.f32 %v153_v26, %v134_v0 }
  0xbb   :  { %v189_v54 = vpop.permute.xlu0 %188 }
  0xbc   :  { %v219_v11 = vmul.f32 %v189_v54, %v179_v1  ;;  %v182_v19 = vmax.f32 %v174_v8, 0.0 }
  0xbe   :  { %v193_v28 = vpop.permute.xlu1 %192 }
  0xbf   :  { %v220_v3 = vmul.f32 %v193_v28, %v180_v63  ;;  %v201_v9 = vpop.permute.xlu0 %200 }
  0xc0   :  { %v222_v27 = vmul.f32 %v201_v9, %v182_v19 }
  0xc1   :  { %v227_v16 = vadd.f32 %v220_v3, %v219_v11 }
  0xc3   :  { %v68_v30 = vpop.permute.xlu1 %67 }
  0xc4   :  { %v85_v12 = vmul.f32 %v78_v37, %v68_v30  ;;  %v169_v20 = vpop.permute.xlu0 %168 }
  0xc6   :  { %v137_v25 = vadd.f32 %v129_v15, %v85_v12 }
  0xc8   :  { %v157_v35 = vpop.permute.xlu1 %156 }
  0xc9   :  { %v175_v13 = vadd.f32 %v157_v35, %v135_v4  ;;  %v217_v36 = vpop.permute.xlu0 %216 }
  0xcb   :  { %v183_v22 = vmax.f32 %v175_v13, 0.0 }
  0xcd   :  { %v197_v41 = vpop.permute.xlu1 %196 }
  0xce   :  { %v221_v14 = vmul.f32 %v197_v41, %v181_v2 }
  0xd0   :  { %v228_v24 = vadd.f32 %v227_v16, %v221_v14 }
  0xd2   :  { %v117_v50 = vpop.permute.xlu1 %116  ;;  %v229_v33 = vadd.f32 %v228_v24, %v222_v27 }
  0xd3   :  { %v130_v5 = vmul.f32 %v122_v39, %v117_v50 }
  0xd5   :  { %v138_v17 = vadd.f32 %v130_v5, %v86_v7 }
  0xd7   :  { %v161_v59 = vpop.permute.xlu1 %160  ;;  %v178_v28 = vadd.f32 %v169_v20, %v138_v17 }
  0xd8   :  { %v176_v18 = vadd.f32 %v161_v59, %v136_v10 }
  0xd9   :  { %v186_v34 = vmax.f32 %v178_v28, 0.0 }
  0xda   :  { %v184_v29 = vmax.f32 %v176_v18, 0.0 }
  0xdb   :  { %v165_v6 = vpop.permute.xlu1 %164  ;;  %v226_v40 = vmul.f32 %v217_v36, %v186_v34 }
  0xdc   :  { %v177_v26 = vadd.f32 %v165_v6, %v137_v25 }
  0xde   :  { %v185_v35 = vmax.f32 %v177_v26, 0.0 }
  0xe0   :  { %v205_v21 = vpop.permute.xlu1 %204 }
  0xe1   :  { %v223_v31 = vmul.f32 %v205_v21, %v183_v22 }
  0xe3   :  { %v230_v23 = vadd.f32 %v229_v33, %v223_v31 }
  0xe4   :  { %v209_v32 = vpop.permute.xlu1 %208 }
  0xe5   :  { %v224_v30 = vmul.f32 %v209_v32, %v184_v29 }
  0xe7   :  { %v231_v38 = vadd.f32 %v230_v23, %v224_v30 }
  0xe8   :  { %v213_v37 = vpop.permute.xlu1 %212 }
  0xe9   :  { %v225_v39 = vmul.f32 %v213_v37, %v185_v35 }
  0xeb   :  { %v232_v41 = vadd.f32 %v231_v38, %v225_v39 }
  0xed   :  { %v233_v42 = vadd.f32 %v232_v41, %v226_v40  ;;  %v242_v48 = vpop.permute.xlu1 %241 }
  0xef   :  { %v234_v43 = vrot.slane %v233_v42, 4 }
  0xf1   :  { %v235_v44 = vadd.f32 %v234_v43, %v233_v42 }
  0xf3   :  { %v236_v45 = vrot.slane %v235_v44, 2 }
  0xf5   :  { %v237_v46 = vadd.f32 %v236_v45, %v235_v44 }
  0xf7   :  { %v238_v47 = vrot.slane %v237_v46, 1 }
  0xf9   :  { %v239_v49 = vadd.f32 %v238_v47, %v237_v46 }
  0xfb   :  { %v244_v50 = vadd.f32 %v242_v48, %v239_v49 }
  0xfd   :  { %v267_v51 = vmul.f32 -1.442695, %v244_v50 }
  0xff   :  { %298 = vpow2.f32 %v267_v51 }
 0x109   :  { %v299_v52 = vpop.eup %298 }
 0x10a   :  { %v248_v53 = vadd.f32 1.0, %v299_v52 }
 0x10c   :  { %300 = vrcp.f32 %v248_v53 }
 0x116   :  { %v301_v54 = vpop.eup %300 }
 0x117   :  { %251 = vst [vmem:[#allocation5] sm:$0x1] %v301_v54 }
 0x118   :  { %335 = shalt.err (!%p332_p12)
}
 0x119   :  { %s336_s29 = scalar_lea.hbm %s403_s2, 16 }
 0x11a   :  { %p337_p13 = scmp.ne.s32.totalorder %s403_s2, %s336_s29  ;;  %p340_p0 = scmp.lt.u32.totalorder %s336_s29, %s403_s2 }
 0x11c   :  { %p342_p1 = pnand %p340_p0, %p337_p13 }
 0x11e   :  { %345 = shalt.err (!%p342_p1)
}
 0x11f   :  { %261 = dma.vmem_to_hbm [thread:$0]  %s259_s24, 16, %s403_s2, [#allocation4]  }
 0x120   :  { %348 = dma.done.wait [#allocation4], 16  }
 0x121   :  { %349 = vsyncadd [#allocation4], 4294967280 }
 0x122   :  { %265 = vsyncpa [#allocation3], 1 }
 0x123   :  { %266 = vsyncpa [#allocation4], 1 }

</bundles_post_ra>
